<compile_context>
chip_gen: v5e
topology: v5e:2x2
jax: 0.10.0
libtpu: 0.0.40
codegen_flags: <defaults>
</compile_context>

<pallas_src>
import functools

import jax
import jax.numpy as jnp
from jax.experimental import pallas as pl
from jax.experimental.pallas import tpu as pltpu


def _cdiv(a, b):
    return (a + b - 1) // b


def _ce_label_smooth_kernel(x_ref, t_ref, out_ref, *, epsilon, num_classes):
    """One batch tile of label-smoothed cross entropy.

    x_ref:   (TB, K) logits in their original dtype (f32 or bf16)
    t_ref:   (TB, 1) int32 labels
    out_ref: (TB, 1) f32 per-sample loss: (-smoothed_targets * log_probs).sum(1)
    """
    xr = x_ref[...]                                       # (TB, K), input dtype
    tb, k = xr.shape

    # Row max in the input dtype (exact for max), upcast only afterwards.
    m = jnp.max(xr, axis=1, keepdims=True).astype(jnp.float32)          # (TB, 1)
    shifted = xr.astype(jnp.float32) - m                                # (TB, K)
    lse = jnp.log(jnp.sum(jnp.exp(shifted), axis=1, keepdims=True))     # (TB, 1)

    labels = t_ref[...]                                                 # (TB, 1)
    class_ids = jax.lax.broadcasted_iota(jnp.int32, (tb, k), 1)

    # log_probs[i, y_i] = shifted[i, y_i] - lse[i]   (masked gather, no one-hot)
    label_shifted = jnp.sum(
        jnp.where(class_ids == labels, shifted, 0.0), axis=1, keepdims=True)
    label_logprob = label_shifted - lse                                 # (TB, 1)

    # sum_k log_probs[i, k] = sum_k shifted[i, k] - K * lse[i]
    sum_logprob = jnp.sum(shifted, axis=1, keepdims=True) - jnp.float32(k) * lse

    out_ref[...] = (-(1.0 - epsilon) * label_logprob
                    - (epsilon / num_classes) * sum_logprob)


def cross_entropy_label_smooth(inputs, targets, *, num_classes, epsilon=0.1,
                               keep_dim=False, max_block_batch=8192,
                               vmem_budget_bytes=20 * 1024 * 1024):
    """JAX wrapper mirroring CrossEntropyLabelSmooth.forward.

    inputs:  (B, K) float logits (f32 or bf16 -- passed to the kernel as-is)
    targets: (B,)   int class indices
    """
    B, K = inputs.shape
    assert K == num_classes

    itemsize = jnp.dtype(inputs.dtype).itemsize
    # Real per-row VMEM footprint of one grid step:
    #   2 * K * itemsize : double-buffered logits block
    #   3 * K * 4        : f32 intermediates (upcast/shifted, exp, masked select)
    #   4 * 128 * 4      : lane-padded (TB, 1) label + output blocks, 2 buffers each
    bytes_per_row = 2 * K * itemsize + 3 * K * 4 + 4 * 128 * 4
    tb_cap = max(8, (vmem_budget_bytes // bytes_per_row) // 8 * 8)
    tb_cap = min(tb_cap, max_block_batch)

    if B <= tb_cap:
        TB = B                        # single block == full array (any B allowed)
        grid = 1
    else:
        TB = tb_cap                   # multiple of 8; last block may be partial
        grid = _cdiv(B, TB)
    Bp = grid * TB

    t = targets.astype(jnp.int32)
    if Bp != B:
        # Only the tiny labels vector is padded; the (B, K) logits are NOT.
        t = jnp.pad(t, (0, Bp - B))
    t = t.reshape(Bp, 1)

    kernel = functools.partial(_ce_label_smooth_kernel,
                               epsilon=float(epsilon),
                               num_classes=int(num_classes))

    per_sample = pl.pallas_call(
        kernel,
        out_shape=jax.ShapeDtypeStruct((Bp, 1), jnp.float32),
        grid=(grid,),
        in_specs=[
            pl.BlockSpec((TB, K), lambda i: (i, 0)),
            pl.BlockSpec((TB, 1), lambda i: (i, 0)),
        ],
        out_specs=pl.BlockSpec((TB, 1), lambda i: (i, 0)),
        compiler_params=pltpu.CompilerParams(
            dimension_semantics=("parallel",),
            vmem_limit_bytes=28 * 1024 * 1024,
        ),
    )(inputs, t)

    per_sample = per_sample[:B, 0]                        # drop padded/garbage rows
    if keep_dim:
        return per_sample                                 # (B,)
    # mean(0).sum() over classes == mean over batch of per-sample sums.
    return jnp.mean(per_sample)                           # scalar


def _reference(inputs, targets, num_classes, epsilon, keep_dim):
    log_probs = jax.nn.log_softmax(inputs.astype(jnp.float32), axis=1)
    onehot = jax.nn.one_hot(targets, num_classes, dtype=jnp.float32)
    smoothed = (1.0 - epsilon) * onehot + epsilon / num_classes
    neg = -smoothed * log_probs
    if keep_dim:
        return neg.sum(axis=1)
    return neg.mean(axis=0).sum()


if __name__ == "__main__":
    key = jax.random.PRNGKey(0)
    k1, k2, k3, k4, k5, k6 = jax.random.split(key, 6)

    # Case 1: B=8, K=32, f32 logits; both reduction modes.
    B, K = 8, 32
    logits = jax.random.normal(k1, (B, K), dtype=jnp.float32)
    labels = jax.random.randint(k2, (B,), 0, K, dtype=jnp.int32)

    loss = jax.block_until_ready(
        cross_entropy_label_smooth(logits, labels, num_classes=K,
                                   epsilon=0.1, keep_dim=False))
    ref = _reference(logits, labels, K, 0.1, False)
    assert jnp.allclose(loss, ref, atol=1e-5, rtol=1e-5), (loss, ref)

    loss_k = jax.block_until_ready(
        cross_entropy_label_smooth(logits, labels, num_classes=K,
                                   epsilon=0.1, keep_dim=True))
    ref_k = _reference(logits, labels, K, 0.1, True)
    assert jnp.allclose(loss_k, ref_k, atol=1e-5, rtol=1e-5), (loss_k, ref_k)

    # Case 2: ragged batch (B=10, single full-array block) with bf16 logits
    # passed straight into the kernel (no wrapper-side upcast, no padding).
    B2, K2 = 10, 32
    logits2 = jax.random.normal(k3, (B2, K2), dtype=jnp.float32).astype(jnp.bfloat16)
    labels2 = jax.random.randint(k4, (B2,), 0, K2, dtype=jnp.int32)
    loss2 = jax.block_until_ready(
        cross_entropy_label_smooth(logits2, labels2, num_classes=K2,
                                   epsilon=0.1, keep_dim=True))
    ref2 = _reference(logits2, labels2, K2, 0.1, True)
    assert jnp.allclose(loss2, ref2, atol=2e-2, rtol=2e-2), (loss2, ref2)

    # Case 3: multi-block grid with a partial last block and NO logits padding:
    # B=300 rows, TB forced to 128 -> grid=3 (last block covers rows 256..383).
    B3, K3 = 300, 200
    logits3 = jax.random.normal(k5, (B3, K3), dtype=jnp.float32)
    labels3 = jax.random.randint(k6, (B3,), 0, K3, dtype=jnp.int32)

    loss3 = jax.block_until_ready(
        cross_entropy_label_smooth(logits3, labels3, num_classes=K3,
                                   epsilon=0.1, keep_dim=False,
                                   max_block_batch=128))
    ref3 = _reference(logits3, labels3, K3, 0.1, False)
    assert jnp.allclose(loss3, ref3, atol=1e-5, rtol=1e-5), (loss3, ref3)

    loss3_k = jax.block_until_ready(
        cross_entropy_label_smooth(logits3, labels3, num_classes=K3,
                                   epsilon=0.1, keep_dim=True,
                                   max_block_batch=128))
    ref3_k = _reference(logits3, labels3, K3, 0.1, True)
    assert jnp.allclose(loss3_k, ref3_k, atol=1e-5, rtol=1e-5), (loss3_k, ref3_k)

    print("KERNEL_OK")
</pallas_src>

<mosaic_0001>
module attributes {stable_mosaic.version = 11 : i64} {
  func.func @_ce_label_smooth_kernel(%arg0: i32, %arg1: memref<8x32xf32, #tpu.memory_space<vmem>>, %arg2: memref<8x1xi32, #tpu.memory_space<vmem>>, %arg3: memref<8x1xf32, #tpu.memory_space<vmem>>) attributes {dimension_semantics = [#tpu.dimension_semantics<parallel>], iteration_bounds = array<i64: 1>, scalar_prefetch = 0 : i64, scratch_operands = 0 : i64, tpu.core_type = #tpu.core_type<tc>, window_params = [{transform_indices = @transform_0, window_bounds = array<i64: 8, 32>}, {transform_indices = @transform_1, window_bounds = array<i64: 8, 1>}, {transform_indices = @transform_2, window_bounds = array<i64: 8, 1>}]} {
    %c0 = arith.constant 0 : index
    %c0_0 = arith.constant 0 : index
    %0 = vector.load %arg1[%c0, %c0_0] : memref<8x32xf32, #tpu.memory_space<vmem>>, vector<8x32xf32>
    %cst = arith.constant dense<0xFF800000> : vector<8xf32>
    %1 = vector.multi_reduction <maximumf>, %0, %cst [1] : vector<8x32xf32> to vector<8xf32>
    %2 = vector.shape_cast %1 : vector<8xf32> to vector<8x1xf32>
    %3 = vector.broadcast %2 : vector<8x1xf32> to vector<8x32xf32>
    %4 = arith.subf %0, %3 : vector<8x32xf32>
    %5 = math.exp %4 : vector<8x32xf32>
    %cst_1 = arith.constant dense<0.000000e+00> : vector<8xf32>
    %6 = vector.multi_reduction <add>, %5, %cst_1 [1] : vector<8x32xf32> to vector<8xf32>
    %7 = vector.shape_cast %6 : vector<8xf32> to vector<8x1xf32>
    %8 = math.log %7 : vector<8x1xf32>
    %c0_2 = arith.constant 0 : index
    %c0_3 = arith.constant 0 : index
    %9 = vector.load %arg2[%c0_2, %c0_3] : memref<8x1xi32, #tpu.memory_space<vmem>>, vector<8x1xi32>
    %10 = tpu.iota {dimensions = array<i32: 1>} : vector<8x32xi32>
    %11 = vector.broadcast %9 : vector<8x1xi32> to vector<8x32xi32>
    %12 = arith.cmpi eq, %10, %11 : vector<8x32xi32>
    %cst_4 = arith.constant 0.000000e+00 : f32
    %13 = vector.broadcast %cst_4 : f32 to vector<8x32xf32>
    %14 = arith.select %12, %4, %13 : vector<8x32xi1>, vector<8x32xf32>
    %cst_5 = arith.constant dense<0.000000e+00> : vector<8xf32>
    %15 = vector.multi_reduction <add>, %14, %cst_5 [1] : vector<8x32xf32> to vector<8xf32>
    %16 = vector.shape_cast %15 : vector<8xf32> to vector<8x1xf32>
    %17 = arith.subf %16, %8 : vector<8x1xf32>
    %cst_6 = arith.constant dense<0.000000e+00> : vector<8xf32>
    %18 = vector.multi_reduction <add>, %4, %cst_6 [1] : vector<8x32xf32> to vector<8xf32>
    %19 = vector.shape_cast %18 : vector<8xf32> to vector<8x1xf32>
    %cst_7 = arith.constant 3.200000e+01 : f32
    %20 = vector.broadcast %cst_7 : f32 to vector<8x1xf32>
    %21 = arith.mulf %20, %8 : vector<8x1xf32>
    %22 = arith.subf %19, %21 : vector<8x1xf32>
    %cst_8 = arith.constant -0.899999976 : f32
    %23 = vector.broadcast %cst_8 : f32 to vector<8x1xf32>
    %24 = arith.mulf %23, %17 : vector<8x1xf32>
    %cst_9 = arith.constant 3.125000e-03 : f32
    %25 = vector.broadcast %cst_9 : f32 to vector<8x1xf32>
    %26 = arith.mulf %25, %22 : vector<8x1xf32>
    %27 = arith.subf %24, %26 : vector<8x1xf32>
    %c0_10 = arith.constant 0 : index
    %c0_11 = arith.constant 0 : index
    %28 = vector.load %arg3[%c0_10, %c0_11] : memref<8x1xf32, #tpu.memory_space<vmem>>, vector<8x1xf32>
    tpu.vector_store %arg3[%c0_10, %c0_11], %27 {strides = array<i32>} : memref<8x1xf32, #tpu.memory_space<vmem>>, vector<8x1xf32>,
    return
  }
  func.func @transform_0(%arg0: i32) -> (i32, i32) {
    %c0_i32 = arith.constant 0 : i32
    %c0_i32_0 = arith.constant 0 : i32
    return %arg0, %c0_i32 : i32, i32
  }
  func.func @transform_1(%arg0: i32) -> (i32, i32) {
    %c0_i32 = arith.constant 0 : i32
    %c0_i32_0 = arith.constant 0 : i32
    return %arg0, %c0_i32 : i32, i32
  }
  func.func @transform_2(%arg0: i32) -> (i32, i32) {
    %c0_i32 = arith.constant 0 : i32
    %c0_i32_0 = arith.constant 0 : i32
    return %arg0, %c0_i32 : i32, i32
  }
}

</mosaic_0001>

<bundles_post_ra>
// kernel: tpu_custom_call.1
= control target key start
LH: loop header
LB: loop body
LE: loop exit
PB: predicated region body
PF: predicated region fallthrough
CT: control target
= control target key end

     0   :  { %vm12_vm0 = vcmask 261120   ;;  %v56_v1 = vmov 0   ;;  %v25_v10 = vlaneseq  ;;  %vm44_vm2 = vcmask 7168   ;;  %s85_s0 = inlined_call_operand.vmem [shape: f32[8,32], index: 0, kind: input, shape index: {}]   ;;  %s86_s1 = inlined_call_operand.vmem [shape: s32[8,1], index: 1, kind: input, shape index: {}]   ;;  %s87_s2 = inlined_call_operand.vmem [shape: f32[8,1], index: 2, kind: output, shape index: {}]  }
   0x1   :  { %v11_v0 = vld [vmem:[%s85_s0] sm:$0xff]  ;;  %51 = vset.pattern.permute.xlu0 %v56_v1 }
   0x2   :  { %v13_v2 = vsel %vm12_vm0, %v11_v0, -inf  ;;  %v24_v3 = vld [vmem:[%s86_s1] sm:$0xff]  ;;  %v26_v11 = vand.u32 127, %v25_v10 }
   0x3   :  { %14 = vmax.xlane.f32.xlu0 %v13_v2 }
  0x17   :  { %28 = vperm.xlu0 %51, %v24_v3  }
  0x76   :  { %v15_v4 = vpop.xlane.xlu0 %14 }
  0x77   :  { %v16_v5 = vsub.f32 %v11_v0, %v15_v4 }
  0x79   :  { %v17_v6 = vmul.f32 1.442695, %v16_v5  ;;  %v36_v7 = vsel %vm12_vm0, %v16_v5, 0.0 }
  0x7a   :  { %37 = vadd.xlane.f32.xlu2 %v36_v7 }
  0x7b   :  { %52 = vpow2.f32 %v17_v6 }
  0x81   :  { %v53_v8 = vpop.eup %52 }
  0x82   :  { %v19_v9 = vsel %vm12_vm0, %v53_v8, 0.0 }
  0x83   :  { %20 = vadd.xlane.f32.xlu1 %v19_v9 }
  0x89   :  { %v29_v12 = vpop.permute.xlu0 %28 }
  0x8a   :  { %vm30_vm1 = vcmp.eq.s32.totalorder %v26_v11, %v29_v12 }
  0x8b   :  { %v31_v13 = vsel %vm30_vm1, %v16_v5, 0.0 }
  0x8c   :  { %v32_v14 = vsel %vm12_vm0, %v31_v13, 0.0 }
  0x8d   :  { %33 = vadd.xlane.f32.xlu1 %v32_v14 }
  0xed   :  { %v38_v20 = vpop.xlane.xlu2 %37 }
  0xf6   :  { %v21_v15 = vpop.xlane.xlu1 %20 }
  0xf7   :  { %54 = vlog2.f32 %v21_v15 }
  0xfd   :  { %v55_v16 = vpop.eup %54 }
  0xfe   :  { %v23_v17 = vmul.f32 0.6931472, %v55_v16 }
 0x100   :  { %v39_v18 = vmul.f32 32.0, %v23_v17  ;;  %v34_v19 = vpop.xlane.xlu1 %33 }
 0x101   :  { %v35_v21 = vsub.f32 %v34_v19, %v23_v17 }
 0x102   :  { %v40_v22 = vsub.f32 %v38_v20, %v39_v18 }
 0x103   :  { %v41_v23 = vmul.f32 -0.9, %v35_v21 }
 0x104   :  { %v42_v24 = vmul.f32 0.003125, %v40_v22 }
 0x106   :  { %v43_v25 = vsub.f32 %v41_v23, %v42_v24 }
 0x108   :  { %45 = vst.msk [vmem:[%s87_s2] sm:$0xff] %vm44_vm2, %v43_v25 }

</bundles_post_ra>
